<compile_context>
chip_gen: v5e
topology: v5e:2x2
jax: 0.10.0
libtpu: 0.0.40
codegen_flags: <defaults>
</compile_context>

<pallas_src>
import math

import jax
import jax.numpy as jnp
from jax import lax
from jax.experimental import pallas as pl
from jax.experimental.pallas import tpu as pltpu

HIDDEN = 300  # the module hard-codes 300 everywhere


def _vmem():
    return pl.BlockSpec(memory_space=pltpu.MemorySpace.VMEM)


# ----------------------------- fused kernel ----------------------------------

def _fused_kernel(x_ref, m_ref, bcat_ref, abig_ref, hbig_ref, hself_ref,
                  cat_ref, e_ref, s_ref):
    f32 = jnp.float32
    bf16 = jnp.bfloat16

    # cat = [x @ W^T + b | x]  in one matmul: M = [W^T | I_F], bcat = [b | 0].
    cat = jnp.dot(x_ref[...], m_ref[...], preferred_element_type=f32) + bcat_ref[...]
    cat_ref[...] = cat

    # All three GCN heads in one MXU op:
    #   E_all = A_big @ H_big + Hself_all  (rows 0:Nd = diag, Nd:Nd+Np = proc, rest = med)
    e_all = (jnp.dot(abig_ref[...], hbig_ref[...], preferred_element_type=f32)
             + hself_ref[...])
    e_ref[...] = e_all

    # All similarity scores in one MXU op: scores[b, n] = sum_j ds[b, j] * E_all[n, j]
    ds_b = cat[:, :HIDDEN].astype(bf16)
    s_ref[...] = lax.dot_general(ds_b, e_all.astype(bf16),
                                 (((1,), (1,)), ((), ())),
                                 preferred_element_type=f32)


# --------------------------- host-side folding --------------------------------
# Paid once, outside the kernel.  Valid because *_init == I and *_A_self == I,
# exactly as the original PyTorch module constructs them (buffers, not weights).

def fold_params(params):
    f32, bf16 = jnp.float32, jnp.bfloat16

    lwT = params["linear_w"].T.astype(f32)                         # (F, 300)
    F = lwT.shape[0]
    M = jnp.concatenate([lwT, jnp.eye(F, dtype=f32)], axis=1)      # (F, 300 + F)
    bcat = jnp.concatenate([params["linear_b"].astype(f32),
                            jnp.zeros((F,), f32)]).reshape(1, -1)  # (1, 300 + F)

    def lin_fold(w_key, b_key):
        # Lin(I) = I @ W^T + b = W^T + b
        return (params[w_key].T + params[b_key][None, :]).astype(f32)

    dHin = lin_fold("diag_w_in", "diag_b_in")
    dHself = lin_fold("diag_w_self", "diag_b_self")
    dHout = lin_fold("diag_w_out", "diag_b_out")
    pHin = lin_fold("proc_w_in", "proc_b_in")
    pHself = lin_fold("proc_w_self", "proc_b_self")
    pHout = lin_fold("proc_w_out", "proc_b_out")
    mH = lin_fold("med_w", "med_b")
    mHself = lin_fold("med_w_self", "med_b_self")

    dAin = params["diag_A_in"].astype(f32)
    dAout = params["diag_A_out"].astype(f32)
    pAin = params["proc_A_in"].astype(f32)
    pAout = params["proc_A_out"].astype(f32)
    mA = params["med_A"].astype(f32)

    Nd, Np, Nm = dAin.shape[0], pAin.shape[0], mA.shape[0]
    NE, K = Nd + Np + Nm, 2 * Nd + 2 * Np + Nm      # 72, 128 at test sizes

    # Block-structured adjacency: row blocks = heads, column blocks = [d_in, d_out,
    # p_in, p_out, m], so A_big @ H_big sums each head's in/out contributions.
    A_big = jnp.zeros((NE, K), f32)
    A_big = A_big.at[:Nd, :Nd].set(dAin)
    A_big = A_big.at[:Nd, Nd:2 * Nd].set(dAout)
    A_big = A_big.at[Nd:Nd + Np, 2 * Nd:2 * Nd + Np].set(pAin)
    A_big = A_big.at[Nd:Nd + Np, 2 * Nd + Np:2 * Nd + 2 * Np].set(pAout)
    A_big = A_big.at[Nd + Np:, 2 * Nd + 2 * Np:].set(mA)

    H_big = jnp.concatenate([dHin, dHout, pHin, pHout, mH], axis=0)   # (K, 300)
    Hself = jnp.concatenate([dHself, pHself, mHself], axis=0)         # (NE, 300)

    arrays = (M, bcat, A_big.astype(bf16), H_big.astype(bf16), Hself)
    return arrays, (Nd, Np, Nm)


# --------------------------- forward pass ------------------------------------

def multiclassifier_forward(folded_arrays, dims, ds_embedding_1):
    f32 = jnp.float32
    M, bcat, A_big, H_big, Hself = folded_arrays
    Nd, Np, Nm = dims
    B, F = ds_embedding_1.shape
    NE = Nd + Np + Nm
    K = H_big.shape[0]
    HF = HIDDEN + F

    out_shapes = (
        jax.ShapeDtypeStruct((B, HF), f32),       # [ds_embedding | ds_embedding_1]
        jax.ShapeDtypeStruct((NE, HIDDEN), f32),  # stacked node embeddings [de; pe; me]
        jax.ShapeDtypeStruct((B, NE), f32),       # stacked similarity scores
    )

    args = (ds_embedding_1.astype(f32), M, bcat, A_big, H_big, Hself)

    flops = (2 * B * F * HF            # linear + concat-as-matmul
             + 2 * NE * K * HIDDEN     # block GCN matmul
             + 2 * B * HIDDEN * NE)    # scores
    bytes_accessed = (sum(int(a.size) * a.dtype.itemsize for a in args)
                      + sum(4 * int(math.prod(s.shape)) for s in out_shapes))

    cat, e_all, scores = pl.pallas_call(
        _fused_kernel,
        out_shape=out_shapes,
        in_specs=[_vmem()] * len(args),
        out_specs=tuple(_vmem() for _ in out_shapes),
        cost_estimate=pl.CostEstimate(flops=flops, transcendentals=0,
                                      bytes_accessed=bytes_accessed),
    )(*args)

    de, pe, me = e_all[:Nd], e_all[Nd:Nd + Np], e_all[Nd + Np:]
    outs = [scores[:, :Nd], scores[:, Nd:Nd + Np], scores[:, Nd + Np:]]
    return cat, de, pe, me, outs


# --------------------------- reference (plain JAX) ----------------------------
# Deliberately un-simplified (keeps identity init / identity A_self matmuls) so
# it validates the algebraic folding done in fold_params.

def reference_forward(params, x):
    lin = lambda z, w, b: z @ w.T + b
    ds = lin(x, params["linear_w"], params["linear_b"])

    def g3(pre):
        init = params[f"{pre}_init"]
        return (params[f"{pre}_A_in"] @ lin(init, params[f"{pre}_w_in"], params[f"{pre}_b_in"])
                + params[f"{pre}_A_self"] @ lin(init, params[f"{pre}_w_self"], params[f"{pre}_b_self"])
                + params[f"{pre}_A_out"] @ lin(init, params[f"{pre}_w_out"], params[f"{pre}_b_out"]))

    de = g3("diag")
    pe = g3("proc")
    me = (params["med_A"] @ lin(params["med_init"], params["med_w"], params["med_b"])
          + params["med_A_self"] @ lin(params["med_init"], params["med_w_self"], params["med_b_self"]))
    outs = [jnp.sum(ds[:, None, :] * e[None, :, :], axis=2) for e in (de, pe, me)]
    return jnp.concatenate([ds, x], axis=1), de, pe, me, outs


# ------------------------------ setup ----------------------------------------

def make_params(key, feature_dim, n_diag, n_proc, n_med):
    ks = iter(jax.random.split(key, 64))
    nrm = lambda shape, s=0.02: (s * jax.random.normal(next(ks), shape)).astype(jnp.float32)

    p = {
        "linear_w": nrm((HIDDEN, feature_dim)),
        "linear_b": nrm((HIDDEN,)),
    }

    def add_gcn3(pre, n):
        # identity init embeddings / identity self-adjacency, exactly as the module builds them
        p[f"{pre}_init"] = jnp.eye(n, dtype=jnp.float32)
        p[f"{pre}_A_in"] = jnp.abs(nrm((n, n), 0.1))
        p[f"{pre}_A_out"] = jnp.abs(nrm((n, n), 0.1))
        p[f"{pre}_A_self"] = jnp.eye(n, dtype=jnp.float32)
        for tag in ("in", "self", "out"):
            p[f"{pre}_w_{tag}"] = nrm((HIDDEN, n))
            p[f"{pre}_b_{tag}"] = nrm((HIDDEN,))

    add_gcn3("diag", n_diag)
    add_gcn3("proc", n_proc)

    p["med_init"] = jnp.eye(n_med, dtype=jnp.float32)
    p["med_A"] = jnp.abs(nrm((n_med, n_med), 0.1))
    p["med_A_self"] = jnp.eye(n_med, dtype=jnp.float32)
    p["med_w"] = nrm((HIDDEN, n_med))
    p["med_b"] = nrm((HIDDEN,))
    p["med_w_self"] = nrm((HIDDEN, n_med))
    p["med_b_self"] = nrm((HIDDEN,))
    return p


if __name__ == "__main__":
    B, FEATURE_DIM = 2, 64
    N_DIAG, N_PROC, N_MED = 32, 24, 16

    key = jax.random.PRNGKey(0)
    kx, kp = jax.random.split(key)
    ds_embedding_1 = jax.random.normal(kx, (B, FEATURE_DIM), dtype=jnp.float32)
    params = make_params(kp, FEATURE_DIM, N_DIAG, N_PROC, N_MED)

    folded, dims = fold_params(params)   # host-side folding, paid once
    cat, de, pe, me, outs = multiclassifier_forward(folded, dims, ds_embedding_1)
    jax.block_until_ready((cat, de, pe, me, outs))

    # Sanity check vs plain-JAX reference.  Tolerance 1e-2 covers the bf16 MXU
    # operands (f32 accumulation) used for the two large matmuls, per perf review.
    r_cat, r_de, r_pe, r_me, r_outs = reference_forward(params, ds_embedding_1)
    for a, b in [(cat, r_cat), (de, r_de), (pe, r_pe), (me, r_me),
                 (outs[0], r_outs[0]), (outs[1], r_outs[1]), (outs[2], r_outs[2])]:
        assert a.shape == b.shape, "shape mismatch vs reference"
        assert jnp.allclose(a, b, rtol=1e-2, atol=1e-2), "mismatch vs reference"

    print("KERNEL_OK")
</pallas_src>

<mosaic_0001>
module attributes {stable_mosaic.version = 11 : i64} {
  func.func @_fused_kernel(%arg0: memref<2x64xf32, #tpu.memory_space<vmem>>, %arg1: memref<64x364xf32, #tpu.memory_space<vmem>>, %arg2: memref<1x364xf32, #tpu.memory_space<vmem>>, %arg3: memref<72x128xbf16, #tpu.memory_space<vmem>>, %arg4: memref<128x300xbf16, #tpu.memory_space<vmem>>, %arg5: memref<72x300xf32, #tpu.memory_space<vmem>>, %arg6: memref<2x364xf32, #tpu.memory_space<vmem>>, %arg7: memref<72x300xf32, #tpu.memory_space<vmem>>, %arg8: memref<2x72xf32, #tpu.memory_space<vmem>>) attributes {dimension_semantics = [], scalar_prefetch = 0 : i64, scratch_operands = 0 : i64, tpu.core_type = #tpu.core_type<tc>} {
    %c0 = arith.constant 0 : index
    %c0_0 = arith.constant 0 : index
    %0 = vector.load %arg0[%c0, %c0_0] : memref<2x64xf32, #tpu.memory_space<vmem>>, vector<2x64xf32>
    %c0_1 = arith.constant 0 : index
    %c0_2 = arith.constant 0 : index
    %1 = vector.load %arg1[%c0_1, %c0_2] : memref<64x364xf32, #tpu.memory_space<vmem>>, vector<64x364xf32>
    %cst = arith.constant dense<0.000000e+00> : vector<2x364xf32>
    %2 = tpu.matmul %0, %1, %cst {dimension_numbers = #tpu.dot_dimension_numbers<[1], [0], [0], [1], [0, 0, 1, 1], [], []>} : vector<2x64xf32>, vector<64x364xf32>, vector<2x364xf32> -> vector<2x364xf32>
    %c0_3 = arith.constant 0 : index
    %c0_4 = arith.constant 0 : index
    %3 = vector.load %arg2[%c0_3, %c0_4] : memref<1x364xf32, #tpu.memory_space<vmem>>, vector<1x364xf32>
    %4 = vector.broadcast %3 : vector<1x364xf32> to vector<2x364xf32>
    %5 = arith.addf %2, %4 : vector<2x364xf32>
    %c0_5 = arith.constant 0 : index
    %c0_6 = arith.constant 0 : index
    %6 = vector.load %arg6[%c0_5, %c0_6] : memref<2x364xf32, #tpu.memory_space<vmem>>, vector<2x364xf32>
    tpu.vector_store %arg6[%c0_5, %c0_6], %5 {strides = array<i32>} : memref<2x364xf32, #tpu.memory_space<vmem>>, vector<2x364xf32>,
    %c0_7 = arith.constant 0 : index
    %c0_8 = arith.constant 0 : index
    %7 = vector.load %arg3[%c0_7, %c0_8] : memref<72x128xbf16, #tpu.memory_space<vmem>>, vector<72x128xbf16>
    %c0_9 = arith.constant 0 : index
    %c0_10 = arith.constant 0 : index
    %8 = vector.load %arg4[%c0_9, %c0_10] : memref<128x300xbf16, #tpu.memory_space<vmem>>, vector<128x300xbf16>
    %cst_11 = arith.constant dense<0.000000e+00> : vector<72x300xf32>
    %9 = tpu.matmul %7, %8, %cst_11 {dimension_numbers = #tpu.dot_dimension_numbers<[1], [0], [0], [1], [0, 0, 1, 1], [], []>} : vector<72x128xbf16>, vector<128x300xbf16>, vector<72x300xf32> -> vector<72x300xf32>
    %c0_12 = arith.constant 0 : index
    %c0_13 = arith.constant 0 : index
    %10 = vector.load %arg5[%c0_12, %c0_13] : memref<72x300xf32, #tpu.memory_space<vmem>>, vector<72x300xf32>
    %11 = arith.addf %9, %10 : vector<72x300xf32>
    %c0_14 = arith.constant 0 : index
    %c0_15 = arith.constant 0 : index
    %12 = vector.load %arg7[%c0_14, %c0_15] : memref<72x300xf32, #tpu.memory_space<vmem>>, vector<72x300xf32>
    tpu.vector_store %arg7[%c0_14, %c0_15], %11 {strides = array<i32>} : memref<72x300xf32, #tpu.memory_space<vmem>>, vector<72x300xf32>,
    %13 = vector.extract_strided_slice %5 {offsets = [0, 0], sizes = [2, 300], strides = [1, 1]} : vector<2x364xf32> to vector<2x300xf32>
    %14 = arith.truncf %13 : vector<2x300xf32> to vector<2x300xbf16>
    %15 = arith.truncf %11 : vector<72x300xf32> to vector<72x300xbf16>
    %cst_16 = arith.constant dense<0.000000e+00> : vector<2x72xf32>
    %16 = tpu.matmul %14, %15, %cst_16 {dimension_numbers = #tpu.dot_dimension_numbers<[1], [1], [0], [0], [0, 0, 1, 0], [], []>} : vector<2x300xbf16>, vector<72x300xbf16>, vector<2x72xf32> -> vector<2x72xf32>
    %c0_17 = arith.constant 0 : index
    %c0_18 = arith.constant 0 : index
    %17 = vector.load %arg8[%c0_17, %c0_18] : memref<2x72xf32, #tpu.memory_space<vmem>>, vector<2x72xf32>
    tpu.vector_store %arg8[%c0_17, %c0_18], %16 {strides = array<i32>} : memref<2x72xf32, #tpu.memory_space<vmem>>, vector<2x72xf32>,
    return
  }
}

</mosaic_0001>

<bundles_post_ra>
// kernel: tpu_custom_call.1
= control target key start
LH: loop header
LB: loop body
LE: loop exit
PB: predicated region body
PF: predicated region fallthrough
CT: control target
= control target key end

     0   :  { %14 = vsyncpa [#allocation3], 0  ;;  %s1321_s0 = inlined_call_operand.vmem [shape: f32[2,64], index: 0, kind: input, shape index: {}]   ;;  %s1322_s1 = inlined_call_operand.hbm [shape: f32[64,364], index: 1, kind: input, shape index: {}]   ;;  %s1323_s2 = inlined_call_operand.vmem [shape: f32[1,364], index: 2, kind: input, shape index: {}]   ;;  %s1324_s3 = inlined_call_operand.vmem [shape: bf16[72,128], index: 3, kind: input, shape index: {}]   ;;  %s1325_s4 = inlined_call_operand.vmem [shape: bf16[128,300], index: 4, kind: input, shape index: {}]   ;;  %s1326_s5 = inlined_call_operand.vmem [shape: f32[72,300], index: 5, kind: input, shape index: {}]   ;;  %s1327_s6 = inlined_call_operand.hbm [shape: f32[2,364], index: 6, kind: output, shape index: {0}]   ;;  %s1328_s7 = inlined_call_operand.hbm [shape: f32[72,300], index: 7, kind: output, shape index: {1}]   ;;  %s1329_s8 = inlined_call_operand.hbm [shape: f32[2,72], index: 8, kind: output, shape index: {2}]  }
   0x1   :  { %15 = vsyncpa [#allocation4], 0 }
   0x2   :  { %16 = vsyncpa [#allocation7], 0  ;;  %s23_s29 = sshll.u32 %s1322_s1, 4  ;;  %s887_s30 = smov [#allocation2]   ;;  %s24_s29 = int_to_ptr.hbm [resolvable:$true] %s23_s29 }
   0x3   :  { %s25_s9 = sshll.u32 %s887_s30, 4  ;;  %s888_s10 = smov 384   ;;  %s26_s9 = int_to_ptr.vmem [resolvable:$true] %s25_s9 }
   0x4   :  { %s889_s11 = smov 24  }
   0x5   :  { %31 = dma.hbm_to_vmem [thread:$0]  %s24_s29, 3072, %s26_s9, [#allocation3], %s888_s10, %s888_s10, %s889_s11  }
   0x6   :  { %881 = dma.done.wait [#allocation3], 3072  }
   0x7   :  { %882 = vsyncadd [#allocation3], 4294964224  ;;  %v68_v0 = vld [vmem:[#allocation2 + $0xb0] sm:$0xff]  ;;  %v65_v1 = vld [vmem:[#allocation2 + $0x98] sm:$0xff]  ;;  %vm78_vm0 = vcmask 523264   ;;  %vm147_vm1 = vcmask 1041408  }
   0x8   :  { %v740_v2 = vld [vmem:[%s1325_s4 + $0xa8] sm:$0xf]  ;;  %110 = vmatpush.msra.mxu1 %v68_v0  ;;  %v777_v3 = vld [vmem:[%s1325_s4 + $0xb0] sm:$0xf0]  ;;  %v62_v5 = vld [vmem:[#allocation2 + $0x80] sm:$0xff]  ;;  %vm152_vm2 = vcmask 1043458  }
   0x9   :  { %v741_v4 = vor.u32 %v777_v3, %v740_v2  ;;  %v728_v6 = vld [vmem:[%s1325_s4 + $0x90] sm:$0xf]  ;;  %v774_v7 = vld [vmem:[%s1325_s4 + $0x98] sm:$0xf0]  ;;  %v59_v8 = vld [vmem:[#allocation2 + $0x68] sm:$0xff]  ;;  %vm149_vm3 = vcmask 1043456  }
   0xa   :  { %111 = vmatpush.msra.mxu1 %v65_v1  ;;  %v729_v9 = vor.u32 %v774_v7, %v728_v6  ;;  %v716_v10 = vld [vmem:[%s1325_s4 + $0x78] sm:$0xf]  ;;  %v771_v11 = vld [vmem:[%s1325_s4 + $0x80] sm:$0xf0]  ;;  %v56_v12 = vld [vmem:[#allocation2 + $0x50] sm:$0xff]  ;;  %vm154_vm5 = vcmask 881668  }
   0xb   :  { %381 = vmatpush.bf16.msra.mxu3 %v741_v4  ;;  %v69_v13 = vld [vmem:[#allocation2 + $0xb8] sm:$0xff]  ;;  %v66_v14 = vld [vmem:[#allocation2 + $0xa0] sm:$0xff]  ;;  %v717_v16 = vor.u32 %v771_v11, %v716_v10  ;;  %v63_v18 = vld [vmem:[#allocation2 + $0x88] sm:$0xff]  ;;  %vm482_vm7 = vcmask 359424   ;;  %s602_s16 = sshll.u32 %s1328_s7, 4  ;;  %s592_s19 = sshll.u32 %s1327_s6, 4  ;;  %s603_s16 = int_to_ptr.hbm [resolvable:$true] %s602_s16  ;;  %s593_s19 = int_to_ptr.hbm [resolvable:$true] %s592_s19 }
   0xc   :  { %112 = vmatpush.msra.mxu1 %v62_v5  ;;  %130 = vmatpush.msra.mxu2 %v69_v13  ;;  %v53_v15 = vld [vmem:[#allocation2 + $0x38] sm:$0xff]  ;;  %v704_v17 = vld [vmem:[%s1325_s4 + $0x60] sm:$0xf]  ;;  %v768_v19 = vld [vmem:[%s1325_s4 + $0x68] sm:$0xf0]  ;;  %s891_s20 = smov [#allocation5]  }
   0xd   :  { %v748_v20 = vld [vmem:[%s1325_s4 + $0xb0] sm:$0xf]  ;;  %v778_v21 = vld [vmem:[%s1325_s4 + $0xb8] sm:$0xf0]  ;;  %v50_v22 = vld [vmem:[#allocation2 + $0x20] sm:$0xff]  ;;  %v705_v27 = vor.u32 %v768_v19, %v704_v17  ;;  %s590_s21 = sshll.u32 %s891_s20, 4  ;;  %s591_s21 = int_to_ptr.vmem [resolvable:$true] %s590_s21 }
   0xe   :  { %113 = vmatpush.msra.mxu1 %v59_v8  ;;  %131 = vmatpush.msra.mxu2 %v66_v14  ;;  %v60_v23 = vld [vmem:[#allocation2 + $0x70] sm:$0xff]  ;;  %v67_v24 = vld [vmem:[#allocation2 + $0xa8] sm:$0xff]  ;;  %v749_v28 = vor.u32 %v778_v21, %v748_v20  ;;  %v57_v30 = vld [vmem:[#allocation2 + $0x58] sm:$0xff]  ;;  %s892_s7 = smov [#allocation8]   ;;  %vm583_vm8 = vcmask 582656  }
   0xf   :  { %382 = vmatpush.bf16.msra.mxu3 %v729_v9  ;;  %v64_v25 = vld [vmem:[#allocation2 + $0x90] sm:$0xff]  ;;  %v47_v26 = vld [vmem:[#allocation2 + $0x8] sm:$0xff]  ;;  %90 = vmatpush.msra.mxu0 %v67_v24  ;;  %v736_v32 = vld [vmem:[%s1325_s4 + $0x98] sm:$0xf]  ;;  %s614_s22 = sshll.u32 %s892_s7, 4  ;;  %s615_s22 = int_to_ptr.vmem [resolvable:$true] %s614_s22 }
  0x10   :  { %114 = vmatpush.msra.mxu1 %v56_v12  ;;  %132 = vmatpush.msra.mxu2 %v63_v18  ;;  %v692_v29 = vld [vmem:[%s1325_s4 + $0x48] sm:$0xf]  ;;  %v765_v31 = vld [vmem:[%s1325_s4 + $0x50] sm:$0xf0]  ;;  %v775_v33 = vld [vmem:[%s1325_s4 + $0xa0] sm:$0xf0] }
  0x11   :  { %91 = vmatpush.msra.mxu0 %v64_v25  ;;  %v54_v34 = vld [vmem:[#allocation2 + $0x40] sm:$0xff]  ;;  %v61_v35 = vld [vmem:[#allocation2 + $0x78] sm:$0xff]  ;;  %v693_v37 = vor.u32 %v765_v31, %v692_v29  ;;  %v737_v38 = vor.u32 %v775_v33, %v736_v32  ;;  %v680_v39 = vld [vmem:[%s1325_s4 + $0x30] sm:$0xf] }
  0x12   :  { %115 = vmatpush.msra.mxu1 %v53_v15  ;;  %133 = vmatpush.msra.mxu2 %v60_v23  ;;  %v45_v36 = vld [vmem:[%s1321_s0] sm:$0x3]  ;;  %v51_v40 = vld [vmem:[#allocation2 + $0x28] sm:$0xff]  ;;  %v762_v42 = vld [vmem:[%s1325_s4 + $0x38] sm:$0xf0] }
  0x13   :  { %383 = vmatpush.bf16.msra.mxu3 %v717_v16  ;;  %v58_v41 = vld [vmem:[#allocation2 + $0x60] sm:$0xff]  ;;  %v772_v44 = vld [vmem:[%s1325_s4 + $0x88] sm:$0xf0]  ;;  %92 = vmatpush.msra.mxu0 %v61_v35  ;;  %v48_v45 = vld [vmem:[#allocation2 + $0x10] sm:$0xff]  ;;  %v681_v47 = vor.u32 %v762_v42, %v680_v39 }
  0x14   :  { %116 = vmatpush.msra.mxu1 %v50_v22  ;;  %134 = vmatpush.msra.mxu2 %v57_v30  ;;  %v724_v43 = vld [vmem:[%s1325_s4 + $0x80] sm:$0xf]  ;;  %v55_v46 = vld [vmem:[#allocation2 + $0x48] sm:$0xff]  ;;  %v668_v49 = vld [vmem:[%s1325_s4 + $0x18] sm:$0xf] }
  0x15   :  { %93 = vmatpush.msra.mxu0 %v58_v41  ;;  %v725_v48 = vor.u32 %v772_v44, %v724_v43  ;;  %v52_v50 = vld [vmem:[#allocation2 + $0x30] sm:$0xff]  ;;  %v759_v51 = vld [vmem:[%s1325_s4 + $0x20] sm:$0xf0]  ;;  %v712_v52 = vld [vmem:[%s1325_s4 + $0x68] sm:$0xf] }
  0x16   :  { %117 = vmatpush.msra.mxu1 %v47_v26  ;;  %135 = vmatpush.msra.mxu2 %v54_v34  ;;  %v769_v53 = vld [vmem:[%s1325_s4 + $0x70] sm:$0xf0]  ;;  %v49_v54 = vld [vmem:[#allocation2 + $0x18] sm:$0xff]  ;;  %v776_v55 = vld [vmem:[%s1325_s4 + $0xac] sm:$0xf]  ;;  %v669_v57 = vor.u32 %v759_v51, %v668_v49 }
  0x17   :  { %384 = vmatpush.bf16.msra.mxu3 %v705_v27  ;;  %636 = vmatmul.msk.f32.vlgmr.msra.gmra.mxu1 %vm78_vm0, %v45_v36  ;;  %v742_v56 = vld [vmem:[%s1325_s4 + $0xb4] sm:$0xf0]  ;;  %v713_v58 = vor.u32 %v769_v53, %v712_v52  ;;  %v656_v59 = vld [vmem:[%s1325_s4] sm:$0xf]  ;;  %v756_v61 = vld [vmem:[%s1325_s4 + $0x8] sm:$0xf0] }
  0x18   :  { %447 = vmatpush.bf16.msrb.mxu1 %v749_v28  ;;  %136 = vmatpush.msra.mxu2 %v51_v40  ;;  %v46_v60 = vld [vmem:[#allocation2] sm:$0xff]  ;;  %v700_v62 = vld [vmem:[%s1325_s4 + $0x50] sm:$0xf]  ;;  %v766_v63 = vld [vmem:[%s1325_s4 + $0x58] sm:$0xf0]  ;;  %v745_v0 = vor.u32 %v776_v55, %v742_v56  ;;  %v657_v3 = vor.u32 %v756_v61, %v656_v59 }
  0x19   :  { %94 = vmatpush.msra.mxu0 %v55_v46  ;;  %v773_v1 = vld [vmem:[%s1325_s4 + $0x94] sm:$0xf]  ;;  %v730_v2 = vld [vmem:[%s1325_s4 + $0x9c] sm:$0xf0]  ;;  %v701_v4 = vor.u32 %v766_v63, %v700_v62  ;;  %v688_v5 = vld [vmem:[%s1325_s4 + $0x38] sm:$0xf] }
  0x1a   :  { %137 = vmatpush.msra.mxu2 %v48_v45  ;;  %v763_v6 = vld [vmem:[%s1325_s4 + $0x40] sm:$0xf0]  ;;  %v733_v7 = vor.u32 %v773_v1, %v730_v2  ;;  %v770_v9 = vld [vmem:[%s1325_s4 + $0x7c] sm:$0xf]  ;;  %v718_v10 = vld [vmem:[%s1325_s4 + $0x84] sm:$0xf0] }
  0x1b   :  { %385 = vmatpush.bf16.msra.mxu3 %v693_v37  ;;  %637 = vmatmul.msk.f32.vlgmr.msra.gmra.mxu2 %vm78_vm0, %v45_v36  ;;  %v751_v8 = vld [vmem:[%s1324_s3] sm:$0xff]  ;;  %v689_v11 = vor.u32 %v763_v6, %v688_v5  ;;  %v760_v13 = vld [vmem:[%s1325_s4 + $0x28] sm:$0xf0]  ;;  %v721_v14 = vor.u32 %v770_v9, %v718_v10  ;;  %v706_v16 = vld [vmem:[%s1325_s4 + $0x6c] sm:$0xf0] }
  0x1c   :  { %448 = vmatpush.bf16.msrb.mxu1 %v737_v38  ;;  %95 = vmatpush.msra.mxu0 %v52_v50  ;;  %v676_v12 = vld [vmem:[%s1325_s4 + $0x20] sm:$0xf]  ;;  %v767_v15 = vld [vmem:[%s1325_s4 + $0x64] sm:$0xf]  ;;  %v664_v18 = vld [vmem:[%s1325_s4 + $0x8] sm:$0xf] }
  0x1d   :  { %v677_v17 = vor.u32 %v760_v13, %v676_v12  ;;  %v757_v19 = vld [vmem:[%s1325_s4 + $0x10] sm:$0xf0]  ;;  %v709_v20 = vor.u32 %v767_v15, %v706_v16  ;;  %v764_v21 = vld [vmem:[%s1325_s4 + $0x4c] sm:$0xf]  ;;  %v694_v22 = vld [vmem:[%s1325_s4 + $0x54] sm:$0xf0] }
  0x1e   :  { %96 = vmatpush.msra.mxu0 %v49_v54  ;;  %v665_v23 = vor.u32 %v757_v19, %v664_v18  ;;  %v697_v24 = vor.u32 %v764_v21, %v694_v22  ;;  %v761_v25 = vld [vmem:[%s1325_s4 + $0x34] sm:$0xf]  ;;  %v682_v26 = vld [vmem:[%s1325_s4 + $0x3c] sm:$0xf0]  ;;  %v752_v28 = vld [vmem:[%s1324_s3 + $0x8] sm:$0xff] }
  0x1f   :  { %386 = vmatpush.bf16.msra.mxu3 %v681_v47  ;;  %v685_v27 = vor.u32 %v761_v25, %v682_v26  ;;  %v758_v29 = vld [vmem:[%s1325_s4 + $0x1c] sm:$0xf]  ;;  %v670_v30 = vld [vmem:[%s1325_s4 + $0x24] sm:$0xf0]  ;;  %v755_v32 = vld [vmem:[%s1325_s4 + $0x4] sm:$0xf] }
  0x20   :  { %449 = vmatpush.bf16.msrb.mxu1 %v725_v48  ;;  %97 = vmatpush.msra.mxu0 %v46_v60  ;;  %v673_v31 = vor.u32 %v758_v29, %v670_v30  ;;  %v658_v33 = vld [vmem:[%s1325_s4 + $0xc] sm:$0xf0]  ;;  %v165_v37 = vld [vmem:[%s1324_s3 + $0x20] sm:$0xf]  ;;  %vm153_vm4 = vmor %vm152_vm2, %vm147_vm1 }
  0x21   :  { %635 = vmatmul.msk.f32.vlgmr.msra.gmra.mxu0 %vm78_vm0, %v45_v36  ;;  %v661_v34 = vor.u32 %v755_v32, %v658_v33  ;;  %v753_v35 = vld [vmem:[%s1324_s3 + $0x10] sm:$0xff]  ;;  %v754_v36 = vld [vmem:[%s1324_s3 + $0x18] sm:$0xff]  ;;  %v242_v38 = vunpack.c.l.b16 %v165_v37  ;;  %v70_v40 = vld [vmem:[%s1323_s2] sm:$0x7] }
  0x22   :  { %414 = vmatpush.bf16.msrb.mxu0 %v745_v0  ;;  %v73_v41 = vperm.slane %v70_v40, 1  ;;  %v74_v43 = vperm.slane %v70_v40, 2  ;;  %v72_v45 = vperm.slane %v70_v40, 0  ;;  %vm155_vm6 = vmor %vm154_vm5, %vm153_vm4  ;;  %v198_v54 = vld [vmem:[%s1326_s5] sm:$0xff]  ;;  %v201_v59 = vld [vmem:[%s1326_s5 + $0x18] sm:$0xff] }
  0x23   :  { %387 = vmatpush.bf16.msra.mxu3 %v669_v57  ;;  %v247_v39 = vpack.c.b16 %v242_v38, %v242_v38  ;;  %v200_v57 = vld [vmem:[%s1326_s5 + $0x10] sm:$0xff]  ;;  %v203_v0 = vld [vmem:[%s1326_s5 + $0x28] sm:$0xff]  ;;  %v202_v16 = vld [vmem:[%s1326_s5 + $0x20] sm:$0xff] }
  0x24   :  { %450 = vmatpush.bf16.msrb.mxu1 %v713_v58  ;;  %v204_v2 = vld [vmem:[%s1326_s5 + $0x30] sm:$0xff]  ;;  %v207_v12 = vld [vmem:[%s1326_s5 + $0x48] sm:$0xff]  ;;  %v209_v18 = vld [vmem:[%s1326_s5 + $0x58] sm:$0xff] }
  0x25   :  { %v210_v22 = vld [vmem:[%s1326_s5 + $0x60] sm:$0xff]  ;;  %v212_v29 = vld [vmem:[%s1326_s5 + $0x70] sm:$0xff]  ;;  %v213_v33 = vld [vmem:[%s1326_s5 + $0x78] sm:$0xff] }
  0x26   :  { %415 = vmatpush.bf16.msrb.mxu0 %v733_v7  ;;  %v199_v7 = vld [vmem:[%s1326_s5 + $0x8] sm:$0xff]  ;;  %v208_v37 = vld [vmem:[%s1326_s5 + $0x50] sm:$0xff] }
  0x27   :  { %388 = vmatpush.bf16.msra.mxu3 %v657_v3  ;;  %v215_v38 = vld [vmem:[%s1326_s5 + $0x88] sm:$0xff] }
  0x28   :  { %451 = vmatpush.bf16.msrb.mxu1 %v701_v4 }
  0x2a   :  { %389 = vmatmul.bf16.vlgmr.msra.gmra.mxu3 %v751_v8  ;;  %416 = vmatpush.bf16.msrb.mxu0 %v721_v14 }
  0x2c   :  { %452 = vmatpush.bf16.msrb.mxu1 %v689_v11 }
  0x2e   :  { %417 = vmatpush.bf16.msrb.mxu0 %v709_v20 }
  0x30   :  { %453 = vmatpush.bf16.msrb.mxu1 %v677_v17 }
  0x32   :  { %418 = vmatpush.bf16.msrb.mxu0 %v697_v24 }
  0x34   :  { %454 = vmatpush.bf16.msrb.mxu1 %v665_v23 }
  0x36   :  { %419 = vmatpush.bf16.msrb.mxu0 %v685_v27 }
  0x37   :  { %455 = vmatmul.bf16.vlgmr.msrb.gmra.mxu1 %v751_v8 }
  0x3a   :  { %394 = vmatmul.bf16.gmra.mxu3 %v752_v28  ;;  %420 = vmatpush.bf16.msrb.mxu0 %v673_v31 }
  0x3e   :  { %421 = vmatpush.bf16.msrb.mxu0 %v661_v34 }
  0x41   :  { %422 = vmatmul.bf16.vlgmr.msrb.gmra.mxu0 %v751_v8  ;;  %v206_v8 = vld [vmem:[%s1326_s5 + $0x40] sm:$0xff] }
  0x47   :  { %460 = vmatmul.bf16.gmra.mxu1 %v752_v28 }
  0x4a   :  { %399 = vmatmul.bf16.gmra.mxu3 %v753_v35 }
  0x51   :  { %427 = vmatmul.bf16.gmra.mxu0 %v752_v28  ;;  %v205_v28 = vld [vmem:[%s1326_s5 + $0x38] sm:$0xff] }
  0x57   :  { %465 = vmatmul.bf16.gmra.mxu1 %v753_v35 }
  0x5a   :  { %404 = vmatmul.bf16.gmra.mxu3 %v754_v36 }
  0x61   :  { %432 = vmatmul.bf16.gmra.mxu0 %v753_v35 }
  0x67   :  { %470 = vmatmul.bf16.gmra.mxu1 %v754_v36 }
  0x6a   :  { %409 = vmatmul.bf16.gmra.mxu3 %v247_v39 }
  0x71   :  { %437 = vmatmul.bf16.gmra.mxu0 %v754_v36 }
  0x77   :  { %475 = vmatmul.bf16.gmra.mxu1 %v247_v39 }
  0x81   :  { %442 = vmatmul.bf16.gmra.mxu0 %v247_v39 }
  0x94   :  { %v119_v42 = vpop.f32.mrf.mxu1 }
  0x95   :  { %v1112_v44 = vadd.f32 %v119_v42, %v73_v41  ;;  %v216_v42 = vld [vmem:[%s1326_s5 + $0x90] sm:$0xff] }
  0x97   :  { %v145_v49 = vrot.slane %v1112_v44, 6 }
  0x9e   :  { %v139_v46 = vpop.f32.mrf.mxu2  ;;  %v99_v48 = vpop.f32.mrf.mxu0 }
  0x9f   :  { %v1114_v47 = vadd.f32 %v139_v46, %v74_v43  ;;  %v1117_v50 = vadd.f32 %v99_v48, %v72_v45 }
  0xa1   :  { %v146_v51 = vrot.slane %v1114_v47, 4  ;;  %v148_v52 = vsel %vm147_vm1, %v1117_v50, %v145_v49  ;;  %v211_v49 = vld [vmem:[%s1326_s5 + $0x68] sm:$0xff] }
  0xa3   :  { %v150_v53 = vsel %vm149_vm3, %v148_v52, %v146_v51  ;;  %v218_v51 = vld [vmem:[%s1326_s5 + $0xa0] sm:$0xff] }
  0xa4   :  { %156 = vst.msk [vmem:[#allocation5] sm:$0x3f] %vm155_vm6, %v150_v53 }
  0xa5   :  { %595 = dma.vmem_to_hbm [thread:$0]  %s591_s21, 96, %s593_s19, [#allocation4]  }
  0xad   :  { %v390_v55 = vpop.f32.mrf.mxu3 }
  0xae   :  { %v1124_v56 = vadd.f32 %v390_v55, %v198_v54  ;;  %v219_v55 = vld [vmem:[%s1326_s5 + $0xa8] sm:$0xff] }
  0xb0   :  { %480 = vst [vmem:[#allocation6] sm:$0xff] %v1124_v56 }
  0xb4   :  { %v456_v58 = vpop.f32.mrf.mxu1 }
  0xb5   :  { %v1133_v60 = vadd.f32 %v456_v58, %v200_v57  ;;  %v392_v61 = vpop.f32.mrf.mxu3 }
  0xb6   :  { %v1137_v62 = vadd.f32 %v392_v61, %v201_v59  ;;  %v214_v61 = vld [vmem:[%s1326_s5 + $0x80] sm:$0xff] }
  0xb7   :  { %483 = vst.msk [vmem:[#allocation6 + $0x10] sm:$0xff] %vm482_vm7, %v1133_v60 }
  0xb8   :  { %484 = vst [vmem:[#allocation6 + $0x18] sm:$0xff] %v1137_v62  ;;  %v511_v63 = vpack.c.bf16 %v1137_v62, %v1124_v56 }
  0xbc   :  { %v458_v1 = vpop.f32.mrf.mxu1 }
  0xbd   :  { %v1148_v3 = vadd.f32 %v458_v1, %v203_v0  ;;  %v395_v4 = vpop.f32.mrf.mxu3  ;;  %v221_v0 = vld [vmem:[%s1326_s5 + $0xb8] sm:$0xff] }
  0xbe   :  { %v1152_v5 = vadd.f32 %v395_v4, %v204_v2  ;;  %v423_v9 = vpop.f32.mrf.mxu0 }
  0xbf   :  { %486 = vst.msk [vmem:[#allocation6 + $0x28] sm:$0xff] %vm482_vm7, %v1148_v3  ;;  %v513_v6 = vpack.c.bf16 %v1148_v3, %v1133_v60  ;;  %v1163_v10 = vadd.f32 %v423_v9, %v199_v7  ;;  %v222_v7 = vld [vmem:[%s1326_s5 + $0xc0] sm:$0xff] }
  0xc0   :  { %487 = vst [vmem:[#allocation6 + $0x30] sm:$0xff] %v1152_v5 }
  0xc1   :  { %481 = vst [vmem:[#allocation6 + $0x8] sm:$0xff] %v1163_v10 }
  0xc4   :  { %v461_v11 = vpop.f32.mrf.mxu1 }
  0xc5   :  { %v1168_v13 = vadd.f32 %v461_v11, %v206_v8  ;;  %v397_v14 = vpop.f32.mrf.mxu3 }
  0xc6   :  { %v1173_v15 = vadd.f32 %v397_v14, %v207_v12  ;;  %v425_v19 = vpop.f32.mrf.mxu0  ;;  %v217_v12 = vld [vmem:[%s1326_s5 + $0x98] sm:$0xff] }
  0xc7   :  { %489 = vst.msk [vmem:[#allocation6 + $0x40] sm:$0xff] %vm482_vm7, %v1168_v13  ;;  %v1184_v20 = vadd.f32 %v425_v19, %v202_v16  ;;  %v224_v16 = vld [vmem:[%s1326_s5 + $0xd0] sm:$0xff] }
  0xc8   :  { %490 = vst [vmem:[#allocation6 + $0x48] sm:$0xff] %v1173_v15  ;;  %v514_v17 = vpack.c.bf16 %v1173_v15, %v1152_v5  ;;  %v530_v5 = vsel %vm482_vm7, %v513_v6, 0 }
  0xc9   :  { %485 = vst [vmem:[#allocation6 + $0x20] sm:$0xff] %v1184_v20  ;;  %v512_v24 = vpack.c.bf16 %v1184_v20, %v1163_v10 }
  0xcc   :  { %v463_v21 = vpop.f32.mrf.mxu1 }
  0xcd   :  { %v1189_v23 = vadd.f32 %v463_v21, %v209_v18  ;;  %v400_v25 = vpop.f32.mrf.mxu3 }
  0xce   :  { %v1196_v26 = vadd.f32 %v400_v25, %v210_v22  ;;  %v428_v30 = vpop.f32.mrf.mxu0 }
  0xcf   :  { %492 = vst.msk [vmem:[#allocation6 + $0x58] sm:$0xff] %vm482_vm7, %v1189_v23  ;;  %v516_v27 = vpack.c.bf16 %v1189_v23, %v1168_v13  ;;  %v1207_v31 = vadd.f32 %v428_v30, %v205_v28  ;;  %v510_v13 = vpack.c.bf16 %v1114_v47, %v1114_v47 }
  0xd0   :  { %493 = vst [vmem:[#allocation6 + $0x60] sm:$0xff] %v1196_v26 }
  0xd1   :  { %488 = vst [vmem:[#allocation6 + $0x38] sm:$0xff] %v1207_v31 }
  0xd4   :  { %v466_v32 = vpop.f32.mrf.mxu1 }
  0xd5   :  { %v1212_v34 = vadd.f32 %v466_v32, %v212_v29  ;;  %v402_v35 = vpop.f32.mrf.mxu3  ;;  %v220_v29 = vld [vmem:[%s1326_s5 + $0xb0] sm:$0xff] }
  0xd6   :  { %v1217_v36 = vadd.f32 %v402_v35, %v213_v33  ;;  %v430_v39 = vpop.f32.mrf.mxu0 }
  0xd7   :  { %495 = vst.msk [vmem:[#allocation6 + $0x70] sm:$0xff] %vm482_vm7, %v1212_v34  ;;  %v1226_v40 = vadd.f32 %v430_v39, %v208_v37 }
  0xd8   :  { %496 = vst [vmem:[#allocation6 + $0x78] sm:$0xff] %v1217_v36 }
  0xd9   :  { %491 = vst [vmem:[#allocation6 + $0x50] sm:$0xff] %v1226_v40  ;;  %v515_v45 = vpack.c.bf16 %v1226_v40, %v1207_v31 }
  0xdc   :  { %v468_v41 = vpop.f32.mrf.mxu1 }
  0xdd   :  { %v1231_v43 = vadd.f32 %v468_v41, %v215_v38  ;;  %v405_v46 = vpop.f32.mrf.mxu3  ;;  %v223_v41 = vld [vmem:[%s1326_s5 + $0xc8] sm:$0xff]  ;;  %s890_s5 = smov [#allocation6]  }
  0xde   :  { %v406_v48 = vadd.f32 %v405_v46, %v216_v42  ;;  %v433_v52 = vpop.f32.mrf.mxu0  ;;  %v517_v42 = vpack.c.bf16 %v1217_v36, %v1196_v26  ;;  %v533_v26 = vsel %vm482_vm7, %v516_v27, 0  ;;  %s600_s1 = sshll.u32 %s890_s5, 4  ;;  %s601_s1 = int_to_ptr.vmem [resolvable:$true] %s600_s1 }
  0xdf   :  { %498 = vst.msk [vmem:[#allocation6 + $0x88] sm:$0xff] %vm482_vm7, %v1231_v43  ;;  %v1244_v53 = vadd.f32 %v433_v52, %v211_v49  ;;  %v519_v49 = vpack.c.bf16 %v1231_v43, %v1212_v34  ;;  %v508_v34 = vpack.c.bf16 %v1117_v50, %v1117_v50  ;;  %v509_v50 = vpack.c.bf16 %v1112_v44, %v1112_v44 }
  0xe0   :  { %499 = vst [vmem:[#allocation6 + $0x90] sm:$0xff] %v406_v48 }
  0xe1   :  { %494 = vst [vmem:[#allocation6 + $0x68] sm:$0xff] %v1244_v53 }
  0xe4   :  { %v471_v54 = vpop.f32.mrf.mxu1 }
  0xe5   :  { %v472_v57 = vadd.f32 %v471_v54, %v218_v51  ;;  %v407_v58 = vpop.f32.mrf.mxu3  ;;  %v536_v51 = vsel %vm482_vm7, %v519_v49, 0 }
  0xe6   :  { %v408_v59 = vadd.f32 %v407_v58, %v219_v55  ;;  %v435_v1 = vpop.f32.mrf.mxu0 }
  0xe7   :  { %501 = vst.msk [vmem:[#allocation6 + $0xa0] sm:$0xff] %vm482_vm7, %v472_v57  ;;  %v436_v2 = vadd.f32 %v435_v1, %v214_v61 }
  0xe8   :  { %502 = vst [vmem:[#allocation6 + $0xa8] sm:$0xff] %v408_v59  ;;  %v520_v30 = vpack.c.bf16 %v408_v59, %v406_v48 }
  0xe9   :  { %497 = vst [vmem:[#allocation6 + $0x80] sm:$0xff] %v436_v2  ;;  %v518_v56 = vpack.c.bf16 %v436_v2, %v1244_v53 }
  0xec   :  { %v473_v4 = vpop.f32.mrf.mxu1 }
  0xed   :  { %v474_v8 = vadd.f32 %v473_v4, %v221_v0  ;;  %v410_v9 = vpop.f32.mrf.mxu3 }
  0xee   :  { %v411_v11 = vadd.f32 %v410_v9, %v222_v7  ;;  %v438_v18 = vpop.f32.mrf.mxu0 }
  0xef   :  { %504 = vst.msk [vmem:[#allocation6 + $0xb8] sm:$0xff] %vm482_vm7, %v474_v8  ;;  %v439_v19 = vadd.f32 %v438_v18, %v217_v12  ;;  %v522_v35 = vpack.c.bf16 %v474_v8, %v472_v57 }
  0xf0   :  { %505 = vst [vmem:[#allocation6 + $0xc0] sm:$0xff] %v411_v11  ;;  %v523_v14 = vpack.c.bf16 %v411_v11, %v411_v11 }
  0xf1   :  { %500 = vst [vmem:[#allocation6 + $0x98] sm:$0xff] %v439_v19  ;;  %v539_v39 = vsel %vm482_vm7, %v522_v35, 0 }
  0xf2   :  { %547 = vmatpush.bf16.xpose.msrb.mxu2 %v523_v14 }
  0xf4   :  { %v476_v21 = vpop.f32.mrf.mxu1 }
  0xf5   :  { %v477_v22 = vadd.f32 %v476_v21, %v224_v16  ;;  %v412_v25 = vpop.f32.mrf.mxu3 }
  0xf6   :  { %v440_v33 = vpop.f32.mrf.mxu0 }
  0xf7   :  { %507 = vst.msk [vmem:[#allocation6 + $0xd0] sm:$0xff] %vm482_vm7, %v477_v22  ;;  %v525_v28 = vpack.c.bf16 %v477_v22, %v477_v22  ;;  %v441_v37 = vadd.f32 %v440_v33, %v220_v29 }
  0xf9   :  { %v542_v32 = vsel %vm482_vm7, %v525_v28, 0  ;;  %503 = vst [vmem:[#allocation6 + $0xb0] sm:$0xff] %v441_v37  ;;  %v521_v15 = vpack.c.bf16 %v441_v37, %v439_v19 }
  0xfa   :  { %573 = vmatpush.bf16.xpose.msrb.mxu3 %v542_v32  ;;  %548 = vmatpush.bf16.xpose.msrb.mxu2 %v520_v30 }
  0xfc   :  { %v478_v38 = vpop.f32.mrf.mxu1 }
  0xfe   :  { %v443_v46 = vpop.f32.mrf.mxu0 }
  0xff   :  { %v444_v48 = vadd.f32 %v443_v46, %v223_v41 }
 0x101   :  { %506 = vst [vmem:[#allocation6 + $0xc8] sm:$0xff] %v444_v48  ;;  %v524_v54 = vpack.c.bf16 %v444_v48, %v444_v48 }
 0x102   :  { %574 = vmatpush.bf16.xpose.msrb.mxu3 %v539_v39  ;;  %549 = vmatpush.bf16.xpose.msrb.mxu2 %v517_v42  ;;  %608 = dma.vmem_to_hbm [thread:$0]  %s601_s1, 3456, %s603_s16, [#allocation7], %s888_s10, %s888_s10, %s889_s11  }
 0x103   :  { %s616_s10 = sshll.u32 %s1329_s8, 4  ;;  %s617_s10 = int_to_ptr.hbm [resolvable:$true] %s616_s10 }
 0x106   :  { %v445_v52 = vpop.f32.mrf.mxu0 }
 0x10a   :  { %575 = vmatpush.bf16.xpose.msrb.mxu3 %v536_v51  ;;  %550 = vmatpush.bf16.xpose.msrb.mxu2 %v514_v17 }
 0x112   :  { %576 = vmatpush.bf16.xpose.msrb.mxu3 %v533_v26  ;;  %551 = vmatpush.bf16.xpose.msrb.mxu2 %v511_v63 }
 0x119   :  { %552 = vmatmul.bf16.vlgmr.msrb.gmra.mxu2 %v508_v34 }
 0x11a   :  { %560 = vmatpush.bf16.xpose.msra.mxu2 %v524_v54  ;;  %577 = vmatpush.bf16.xpose.msrb.mxu3 %v530_v5 }
 0x121   :  { %750 = vmatmul.msk.bf16.vlgmr.msrb.gmra.mxu3 %vm482_vm7, %v510_v13 }
 0x122   :  { %561 = vmatpush.bf16.xpose.msra.mxu2 %v521_v15 }
 0x12a   :  { %562 = vmatpush.bf16.xpose.msra.mxu2 %v518_v56 }
 0x132   :  { %563 = vmatpush.bf16.xpose.msra.mxu2 %v515_v45 }
 0x13a   :  { %564 = vmatpush.bf16.xpose.msra.mxu2 %v512_v24 }
 0x141   :  { %565 = vmatmul.bf16.vlgmr.msra.gmra.mxu2 %v509_v50 }
 0x19c   :  { %v553_v44 = vpop.f32.mrf.mxu2 }
 0x1a4   :  { %v579_v47 = vpop.f32.mrf.mxu3  ;;  %v555_v60 = vpop.f32.mrf.mxu2 }
 0x1ac   :  { %v581_v62 = vpop.f32.mrf.mxu3 }
 0x1c4   :  { %v566_v63 = vpop.f32.mrf.mxu2 }
 0x1c5   :  { %v567_v3 = vadd.f32 %v566_v63, %v553_v44 }
 0x1c7   :  { %v580_v6 = vadd.f32 %v579_v47, %v567_v3 }
 0x1c9   :  { %584 = vst.msk [vmem:[#allocation8] sm:$0x3] %vm583_vm8, %v580_v6 }
 0x1ca   :  { %619 = dma.vmem_to_hbm [thread:$0]  %s615_s22, 32, %s617_s10, [#allocation7]  }
 0x1cc   :  { %v568_v10 = vpop.f32.mrf.mxu2 }
 0x1cd   :  { %883 = dma.done.wait [#allocation4], 96  }
 0x1ce   :  { %884 = vsyncadd [#allocation4], 4294967200 }
 0x1cf   :  { %885 = dma.done.wait [#allocation7], 3488  }
 0x1d0   :  { %886 = vsyncadd [#allocation7], 4294963808 }
 0x1d1   :  { %632 = vsyncpa [#allocation3], 1 }
 0x1d2   :  { %633 = vsyncpa [#allocation4], 1 }
 0x1d3   :  { %634 = vsyncpa [#allocation7], 1 }

</bundles_post_ra>
